<compile_context>
chip_gen: v7x
topology: tpu7x:2x2x1
jax: 0.10.0
libtpu: 0.0.40
codegen_flags: <defaults>
</compile_context>

<pallas_src>
import jax
import jax.numpy as jnp
from jax.experimental import pallas as pl
from jax.experimental.pallas import tpu as pltpu


def conv3x3_pallas(x_nchw, w_oihw, bias):
    """Conv2d(in_ch, out_ch, kernel_size=3, stride=1, padding=0) forward.

    x_nchw: (N, Cin, H, W) float32
    w_oihw: (Cout, Cin, 3, 3) float32
    bias:   (Cout,) float32
    returns (N, Cout, H-2, W-2) float32
    """
    N, Cin, H, W = x_nchw.shape
    Cout = w_oihw.shape[0]
    Ho, Wo = H - 2, W - 2

    # Flat-index geometry (all static Python ints, closed over by the kernel).
    HW = H * W
    Q = (Ho - 1) * W + Wo      # number of flat output columns actually computed
    QPAD = Ho * W              # stored width; reshapes cleanly to (Ho, W)

    def _kernel(xf_ref, w_ref, b_ref, o_ref):
        # xf_ref: (N, Cin, H*W)   flattened input rows (free reshape of NCHW)
        # w_ref:  (Cout, 9*Cin)   weights ordered [tap=kh*3+kw][c]
        # b_ref:  (Cout, 1)       bias column
        # o_ref:  (N, Cout, Ho*W) flat full-width output
        # Zero the 2 never-computed tail columns so the output block is fully
        # initialized (they are sliced off in the wrapper).
        o_ref[:, :, Q:] = jnp.zeros((N, Cout, QPAD - Q), o_ref.dtype)
        for n in range(N):                       # static unroll, N is tiny
            acc = None
            for kh in range(3):
                for kw in range(3):
                    tap = kh * 3 + kw
                    off = kh * W + kw            # static flat offset of this tap
                    w_tap = w_ref[:, tap * Cin:(tap + 1) * Cin]   # (Cout, Cin)
                    x_tap = xf_ref[n, :, off:off + Q]             # (Cin, Q)
                    d = jnp.dot(w_tap, x_tap,
                                preferred_element_type=jnp.float32)
                    acc = d if acc is None else acc + d
            o_ref[n, :, :Q] = (acc + b_ref[...]).astype(o_ref.dtype)

    # --- wrapper-side layout plumbing (tiny / free) ---
    xf = x_nchw.reshape(N, Cin, HW)                                   # free reshape
    w_k = jnp.transpose(w_oihw, (0, 2, 3, 1)).reshape(Cout, 9 * Cin)  # (Cout, tap*Cin+c)
    b2d = bias.reshape(Cout, 1)

    flops = 2 * N * Cout * Cin * 9 * Ho * Wo
    bytes_accessed = 4 * (N * Cin * HW + Cout * 9 * Cin + Cout + N * Cout * QPAD)

    out_flat = pl.pallas_call(
        _kernel,
        out_shape=jax.ShapeDtypeStruct((N, Cout, QPAD), x_nchw.dtype),
        in_specs=[
            pl.BlockSpec(memory_space=pltpu.MemorySpace.VMEM),
            pl.BlockSpec(memory_space=pltpu.MemorySpace.VMEM),
            pl.BlockSpec(memory_space=pltpu.MemorySpace.VMEM),
        ],
        out_specs=pl.BlockSpec(memory_space=pltpu.MemorySpace.VMEM),
        cost_estimate=pl.CostEstimate(flops=flops, transcendentals=0,
                                      bytes_accessed=bytes_accessed),
    )(xf, w_k, b2d)

    # (N, Cout, Ho*W) -> (N, Cout, Ho, W) is free; drop the 2 invalid columns.
    return out_flat.reshape(N, Cout, Ho, W)[:, :, :, :Wo]


if __name__ == "__main__":
    # Small shapes consistent with the module: batch=2, in_ch=4, out_ch=8, spatial=16.
    N, Cin, Cout, H, W = 2, 4, 8, 16, 16

    key = jax.random.PRNGKey(0)
    kx, kw, kb = jax.random.split(key, 3)
    x = jax.random.normal(kx, (N, Cin, H, W), dtype=jnp.float32)
    # Deterministic parameter init (Conv2d-like uniform fan-in scaling).
    fan_in = Cin * 3 * 3
    bound = 1.0 / (fan_in ** 0.5)
    w = jax.random.uniform(kw, (Cout, Cin, 3, 3), minval=-bound, maxval=bound,
                           dtype=jnp.float32)
    b = jax.random.uniform(kb, (Cout,), minval=-bound, maxval=bound,
                           dtype=jnp.float32)

    conv = jax.jit(conv3x3_pallas)
    out = conv(x, w, b)
    jax.block_until_ready(out)

    # Correctness check vs XLA's conv.
    ref = jax.lax.conv_general_dilated(
        x, w, window_strides=(1, 1), padding="VALID",
        dimension_numbers=("NCHW", "OIHW", "NCHW")) + b[None, :, None, None]
    assert out.shape == (N, Cout, H - 2, W - 2)
    assert jnp.allclose(out, ref, atol=1e-4, rtol=1e-4)

    print("KERNEL_OK")
</pallas_src>

<mosaic_0001>
module attributes {stable_mosaic.version = 11 : i64} {
  func.func @_kernel(%arg0: memref<2x4x256xf32, #tpu.memory_space<vmem>>, %arg1: memref<8x36xf32, #tpu.memory_space<vmem>>, %arg2: memref<8x1xf32, #tpu.memory_space<vmem>>, %arg3: memref<2x8x224xf32, #tpu.memory_space<vmem>>) attributes {dimension_semantics = [], scalar_prefetch = 0 : i64, scratch_operands = 0 : i64, tpu.core_type = #tpu.core_type<tc>} {
    %cst = arith.constant 0.000000e+00 : f32
    %0 = vector.broadcast %cst : f32 to vector<2x8x2xf32>
    %c0 = arith.constant 0 : index
    %c0_0 = arith.constant 0 : index
    %c222 = arith.constant 222 : index
    %1 = vector.load %arg3[%c0, %c0_0, %c222] : memref<2x8x224xf32, #tpu.memory_space<vmem>>, vector<2x8x2xf32>
    tpu.vector_store %arg3[%c0, %c0_0, %c222], %0 {strides = array<i32>} : memref<2x8x224xf32, #tpu.memory_space<vmem>>, vector<2x8x2xf32>,
    %c0_1 = arith.constant 0 : index
    %c0_2 = arith.constant 0 : index
    %2 = vector.load %arg1[%c0_1, %c0_2] : memref<8x36xf32, #tpu.memory_space<vmem>>, vector<8x4xf32>
    %c0_3 = arith.constant 0 : index
    %c0_4 = arith.constant 0 : index
    %c0_5 = arith.constant 0 : index
    %3 = vector.load %arg0[%c0_3, %c0_4, %c0_5] : memref<2x4x256xf32, #tpu.memory_space<vmem>>, vector<1x4x222xf32>
    %4 = vector.shape_cast %3 : vector<1x4x222xf32> to vector<4x222xf32>
    %cst_6 = arith.constant dense<0.000000e+00> : vector<8x222xf32>
    %5 = tpu.matmul %2, %4, %cst_6 {dimension_numbers = #tpu.dot_dimension_numbers<[1], [0], [0], [1], [0, 0, 1, 1], [], []>} : vector<8x4xf32>, vector<4x222xf32>, vector<8x222xf32> -> vector<8x222xf32>
    %c0_7 = arith.constant 0 : index
    %c4 = arith.constant 4 : index
    %6 = vector.load %arg1[%c0_7, %c4] : memref<8x36xf32, #tpu.memory_space<vmem>>, vector<8x4xf32>
    %c0_8 = arith.constant 0 : index
    %c0_9 = arith.constant 0 : index
    %c1 = arith.constant 1 : index
    %7 = vector.load %arg0[%c0_8, %c0_9, %c1] : memref<2x4x256xf32, #tpu.memory_space<vmem>>, vector<1x4x222xf32>
    %8 = vector.shape_cast %7 : vector<1x4x222xf32> to vector<4x222xf32>
    %cst_10 = arith.constant dense<0.000000e+00> : vector<8x222xf32>
    %9 = tpu.matmul %6, %8, %cst_10 {dimension_numbers = #tpu.dot_dimension_numbers<[1], [0], [0], [1], [0, 0, 1, 1], [], []>} : vector<8x4xf32>, vector<4x222xf32>, vector<8x222xf32> -> vector<8x222xf32>
    %10 = arith.addf %5, %9 : vector<8x222xf32>
    %c0_11 = arith.constant 0 : index
    %c8 = arith.constant 8 : index
    %11 = vector.load %arg1[%c0_11, %c8] : memref<8x36xf32, #tpu.memory_space<vmem>>, vector<8x4xf32>
    %c0_12 = arith.constant 0 : index
    %c0_13 = arith.constant 0 : index
    %c2 = arith.constant 2 : index
    %12 = vector.load %arg0[%c0_12, %c0_13, %c2] : memref<2x4x256xf32, #tpu.memory_space<vmem>>, vector<1x4x222xf32>
    %13 = vector.shape_cast %12 : vector<1x4x222xf32> to vector<4x222xf32>
    %cst_14 = arith.constant dense<0.000000e+00> : vector<8x222xf32>
    %14 = tpu.matmul %11, %13, %cst_14 {dimension_numbers = #tpu.dot_dimension_numbers<[1], [0], [0], [1], [0, 0, 1, 1], [], []>} : vector<8x4xf32>, vector<4x222xf32>, vector<8x222xf32> -> vector<8x222xf32>
    %15 = arith.addf %10, %14 : vector<8x222xf32>
    %c0_15 = arith.constant 0 : index
    %c12 = arith.constant 12 : index
    %16 = vector.load %arg1[%c0_15, %c12] : memref<8x36xf32, #tpu.memory_space<vmem>>, vector<8x4xf32>
    %c0_16 = arith.constant 0 : index
    %c0_17 = arith.constant 0 : index
    %c16 = arith.constant 16 : index
    %17 = vector.load %arg0[%c0_16, %c0_17, %c16] : memref<2x4x256xf32, #tpu.memory_space<vmem>>, vector<1x4x222xf32>
    %18 = vector.shape_cast %17 : vector<1x4x222xf32> to vector<4x222xf32>
    %cst_18 = arith.constant dense<0.000000e+00> : vector<8x222xf32>
    %19 = tpu.matmul %16, %18, %cst_18 {dimension_numbers = #tpu.dot_dimension_numbers<[1], [0], [0], [1], [0, 0, 1, 1], [], []>} : vector<8x4xf32>, vector<4x222xf32>, vector<8x222xf32> -> vector<8x222xf32>
    %20 = arith.addf %15, %19 : vector<8x222xf32>
    %c0_19 = arith.constant 0 : index
    %c16_20 = arith.constant 16 : index
    %21 = vector.load %arg1[%c0_19, %c16_20] : memref<8x36xf32, #tpu.memory_space<vmem>>, vector<8x4xf32>
    %c0_21 = arith.constant 0 : index
    %c0_22 = arith.constant 0 : index
    %c17 = arith.constant 17 : index
    %22 = vector.load %arg0[%c0_21, %c0_22, %c17] : memref<2x4x256xf32, #tpu.memory_space<vmem>>, vector<1x4x222xf32>
    %23 = vector.shape_cast %22 : vector<1x4x222xf32> to vector<4x222xf32>
    %cst_23 = arith.constant dense<0.000000e+00> : vector<8x222xf32>
    %24 = tpu.matmul %21, %23, %cst_23 {dimension_numbers = #tpu.dot_dimension_numbers<[1], [0], [0], [1], [0, 0, 1, 1], [], []>} : vector<8x4xf32>, vector<4x222xf32>, vector<8x222xf32> -> vector<8x222xf32>
    %25 = arith.addf %20, %24 : vector<8x222xf32>
    %c0_24 = arith.constant 0 : index
    %c20 = arith.constant 20 : index
    %26 = vector.load %arg1[%c0_24, %c20] : memref<8x36xf32, #tpu.memory_space<vmem>>, vector<8x4xf32>
    %c0_25 = arith.constant 0 : index
    %c0_26 = arith.constant 0 : index
    %c18 = arith.constant 18 : index
    %27 = vector.load %arg0[%c0_25, %c0_26, %c18] : memref<2x4x256xf32, #tpu.memory_space<vmem>>, vector<1x4x222xf32>
    %28 = vector.shape_cast %27 : vector<1x4x222xf32> to vector<4x222xf32>
    %cst_27 = arith.constant dense<0.000000e+00> : vector<8x222xf32>
    %29 = tpu.matmul %26, %28, %cst_27 {dimension_numbers = #tpu.dot_dimension_numbers<[1], [0], [0], [1], [0, 0, 1, 1], [], []>} : vector<8x4xf32>, vector<4x222xf32>, vector<8x222xf32> -> vector<8x222xf32>
    %30 = arith.addf %25, %29 : vector<8x222xf32>
    %c0_28 = arith.constant 0 : index
    %c24 = arith.constant 24 : index
    %31 = vector.load %arg1[%c0_28, %c24] : memref<8x36xf32, #tpu.memory_space<vmem>>, vector<8x4xf32>
    %c0_29 = arith.constant 0 : index
    %c0_30 = arith.constant 0 : index
    %c32 = arith.constant 32 : index
    %32 = vector.load %arg0[%c0_29, %c0_30, %c32] : memref<2x4x256xf32, #tpu.memory_space<vmem>>, vector<1x4x222xf32>
    %33 = vector.shape_cast %32 : vector<1x4x222xf32> to vector<4x222xf32>
    %cst_31 = arith.constant dense<0.000000e+00> : vector<8x222xf32>
    %34 = tpu.matmul %31, %33, %cst_31 {dimension_numbers = #tpu.dot_dimension_numbers<[1], [0], [0], [1], [0, 0, 1, 1], [], []>} : vector<8x4xf32>, vector<4x222xf32>, vector<8x222xf32> -> vector<8x222xf32>
    %35 = arith.addf %30, %34 : vector<8x222xf32>
    %c0_32 = arith.constant 0 : index
    %c28 = arith.constant 28 : index
    %36 = vector.load %arg1[%c0_32, %c28] : memref<8x36xf32, #tpu.memory_space<vmem>>, vector<8x4xf32>
    %c0_33 = arith.constant 0 : index
    %c0_34 = arith.constant 0 : index
    %c33 = arith.constant 33 : index
    %37 = vector.load %arg0[%c0_33, %c0_34, %c33] : memref<2x4x256xf32, #tpu.memory_space<vmem>>, vector<1x4x222xf32>
    %38 = vector.shape_cast %37 : vector<1x4x222xf32> to vector<4x222xf32>
    %cst_35 = arith.constant dense<0.000000e+00> : vector<8x222xf32>
    %39 = tpu.matmul %36, %38, %cst_35 {dimension_numbers = #tpu.dot_dimension_numbers<[1], [0], [0], [1], [0, 0, 1, 1], [], []>} : vector<8x4xf32>, vector<4x222xf32>, vector<8x222xf32> -> vector<8x222xf32>
    %40 = arith.addf %35, %39 : vector<8x222xf32>
    %c0_36 = arith.constant 0 : index
    %c32_37 = arith.constant 32 : index
    %41 = vector.load %arg1[%c0_36, %c32_37] : memref<8x36xf32, #tpu.memory_space<vmem>>, vector<8x4xf32>
    %c0_38 = arith.constant 0 : index
    %c0_39 = arith.constant 0 : index
    %c34 = arith.constant 34 : index
    %42 = vector.load %arg0[%c0_38, %c0_39, %c34] : memref<2x4x256xf32, #tpu.memory_space<vmem>>, vector<1x4x222xf32>
    %43 = vector.shape_cast %42 : vector<1x4x222xf32> to vector<4x222xf32>
    %cst_40 = arith.constant dense<0.000000e+00> : vector<8x222xf32>
    %44 = tpu.matmul %41, %43, %cst_40 {dimension_numbers = #tpu.dot_dimension_numbers<[1], [0], [0], [1], [0, 0, 1, 1], [], []>} : vector<8x4xf32>, vector<4x222xf32>, vector<8x222xf32> -> vector<8x222xf32>
    %45 = arith.addf %40, %44 : vector<8x222xf32>
    %c0_41 = arith.constant 0 : index
    %c0_42 = arith.constant 0 : index
    %46 = vector.load %arg2[%c0_41, %c0_42] : memref<8x1xf32, #tpu.memory_space<vmem>>, vector<8x1xf32>
    %47 = vector.broadcast %46 : vector<8x1xf32> to vector<8x222xf32>
    %48 = arith.addf %45, %47 : vector<8x222xf32>
    %c0_43 = arith.constant 0 : index
    %c0_44 = arith.constant 0 : index
    %c0_45 = arith.constant 0 : index
    %49 = vector.load %arg3[%c0_43, %c0_44, %c0_45] : memref<2x8x224xf32, #tpu.memory_space<vmem>>, vector<1x8x222xf32>
    %50 = vector.shape_cast %49 : vector<1x8x222xf32> to vector<8x222xf32>
    %51 = vector.shape_cast %48 : vector<8x222xf32> to vector<1x8x222xf32>
    tpu.vector_store %arg3[%c0_43, %c0_44, %c0_45], %51 {strides = array<i32>} : memref<2x8x224xf32, #tpu.memory_space<vmem>>, vector<1x8x222xf32>,
    %c0_46 = arith.constant 0 : index
    %c0_47 = arith.constant 0 : index
    %52 = vector.load %arg1[%c0_46, %c0_47] : memref<8x36xf32, #tpu.memory_space<vmem>>, vector<8x4xf32>
    %c1_48 = arith.constant 1 : index
    %c0_49 = arith.constant 0 : index
    %c0_50 = arith.constant 0 : index
    %53 = vector.load %arg0[%c1_48, %c0_49, %c0_50] : memref<2x4x256xf32, #tpu.memory_space<vmem>>, vector<1x4x222xf32>
    %54 = vector.shape_cast %53 : vector<1x4x222xf32> to vector<4x222xf32>
    %cst_51 = arith.constant dense<0.000000e+00> : vector<8x222xf32>
    %55 = tpu.matmul %52, %54, %cst_51 {dimension_numbers = #tpu.dot_dimension_numbers<[1], [0], [0], [1], [0, 0, 1, 1], [], []>} : vector<8x4xf32>, vector<4x222xf32>, vector<8x222xf32> -> vector<8x222xf32>
    %c0_52 = arith.constant 0 : index
    %c4_53 = arith.constant 4 : index
    %56 = vector.load %arg1[%c0_52, %c4_53] : memref<8x36xf32, #tpu.memory_space<vmem>>, vector<8x4xf32>
    %c1_54 = arith.constant 1 : index
    %c0_55 = arith.constant 0 : index
    %c1_56 = arith.constant 1 : index
    %57 = vector.load %arg0[%c1_54, %c0_55, %c1_56] : memref<2x4x256xf32, #tpu.memory_space<vmem>>, vector<1x4x222xf32>
    %58 = vector.shape_cast %57 : vector<1x4x222xf32> to vector<4x222xf32>
    %cst_57 = arith.constant dense<0.000000e+00> : vector<8x222xf32>
    %59 = tpu.matmul %56, %58, %cst_57 {dimension_numbers = #tpu.dot_dimension_numbers<[1], [0], [0], [1], [0, 0, 1, 1], [], []>} : vector<8x4xf32>, vector<4x222xf32>, vector<8x222xf32> -> vector<8x222xf32>
    %60 = arith.addf %55, %59 : vector<8x222xf32>
    %c0_58 = arith.constant 0 : index
    %c8_59 = arith.constant 8 : index
    %61 = vector.load %arg1[%c0_58, %c8_59] : memref<8x36xf32, #tpu.memory_space<vmem>>, vector<8x4xf32>
    %c1_60 = arith.constant 1 : index
    %c0_61 = arith.constant 0 : index
    %c2_62 = arith.constant 2 : index
    %62 = vector.load %arg0[%c1_60, %c0_61, %c2_62] : memref<2x4x256xf32, #tpu.memory_space<vmem>>, vector<1x4x222xf32>
    %63 = vector.shape_cast %62 : vector<1x4x222xf32> to vector<4x222xf32>
    %cst_63 = arith.constant dense<0.000000e+00> : vector<8x222xf32>
    %64 = tpu.matmul %61, %63, %cst_63 {dimension_numbers = #tpu.dot_dimension_numbers<[1], [0], [0], [1], [0, 0, 1, 1], [], []>} : vector<8x4xf32>, vector<4x222xf32>, vector<8x222xf32> -> vector<8x222xf32>
    %65 = arith.addf %60, %64 : vector<8x222xf32>
    %c0_64 = arith.constant 0 : index
    %c12_65 = arith.constant 12 : index
    %66 = vector.load %arg1[%c0_64, %c12_65] : memref<8x36xf32, #tpu.memory_space<vmem>>, vector<8x4xf32>
    %c1_66 = arith.constant 1 : index
    %c0_67 = arith.constant 0 : index
    %c16_68 = arith.constant 16 : index
    %67 = vector.load %arg0[%c1_66, %c0_67, %c16_68] : memref<2x4x256xf32, #tpu.memory_space<vmem>>, vector<1x4x222xf32>
    %68 = vector.shape_cast %67 : vector<1x4x222xf32> to vector<4x222xf32>
    %cst_69 = arith.constant dense<0.000000e+00> : vector<8x222xf32>
    %69 = tpu.matmul %66, %68, %cst_69 {dimension_numbers = #tpu.dot_dimension_numbers<[1], [0], [0], [1], [0, 0, 1, 1], [], []>} : vector<8x4xf32>, vector<4x222xf32>, vector<8x222xf32> -> vector<8x222xf32>
    %70 = arith.addf %65, %69 : vector<8x222xf32>
    %c0_70 = arith.constant 0 : index
    %c16_71 = arith.constant 16 : index
    %71 = vector.load %arg1[%c0_70, %c16_71] : memref<8x36xf32, #tpu.memory_space<vmem>>, vector<8x4xf32>
    %c1_72 = arith.constant 1 : index
    %c0_73 = arith.constant 0 : index
    %c17_74 = arith.constant 17 : index
    %72 = vector.load %arg0[%c1_72, %c0_73, %c17_74] : memref<2x4x256xf32, #tpu.memory_space<vmem>>, vector<1x4x222xf32>
    %73 = vector.shape_cast %72 : vector<1x4x222xf32> to vector<4x222xf32>
    %cst_75 = arith.constant dense<0.000000e+00> : vector<8x222xf32>
    %74 = tpu.matmul %71, %73, %cst_75 {dimension_numbers = #tpu.dot_dimension_numbers<[1], [0], [0], [1], [0, 0, 1, 1], [], []>} : vector<8x4xf32>, vector<4x222xf32>, vector<8x222xf32> -> vector<8x222xf32>
    %75 = arith.addf %70, %74 : vector<8x222xf32>
    %c0_76 = arith.constant 0 : index
    %c20_77 = arith.constant 20 : index
    %76 = vector.load %arg1[%c0_76, %c20_77] : memref<8x36xf32, #tpu.memory_space<vmem>>, vector<8x4xf32>
    %c1_78 = arith.constant 1 : index
    %c0_79 = arith.constant 0 : index
    %c18_80 = arith.constant 18 : index
    %77 = vector.load %arg0[%c1_78, %c0_79, %c18_80] : memref<2x4x256xf32, #tpu.memory_space<vmem>>, vector<1x4x222xf32>
    %78 = vector.shape_cast %77 : vector<1x4x222xf32> to vector<4x222xf32>
    %cst_81 = arith.constant dense<0.000000e+00> : vector<8x222xf32>
    %79 = tpu.matmul %76, %78, %cst_81 {dimension_numbers = #tpu.dot_dimension_numbers<[1], [0], [0], [1], [0, 0, 1, 1], [], []>} : vector<8x4xf32>, vector<4x222xf32>, vector<8x222xf32> -> vector<8x222xf32>
    %80 = arith.addf %75, %79 : vector<8x222xf32>
    %c0_82 = arith.constant 0 : index
    %c24_83 = arith.constant 24 : index
    %81 = vector.load %arg1[%c0_82, %c24_83] : memref<8x36xf32, #tpu.memory_space<vmem>>, vector<8x4xf32>
    %c1_84 = arith.constant 1 : index
    %c0_85 = arith.constant 0 : index
    %c32_86 = arith.constant 32 : index
    %82 = vector.load %arg0[%c1_84, %c0_85, %c32_86] : memref<2x4x256xf32, #tpu.memory_space<vmem>>, vector<1x4x222xf32>
    %83 = vector.shape_cast %82 : vector<1x4x222xf32> to vector<4x222xf32>
    %cst_87 = arith.constant dense<0.000000e+00> : vector<8x222xf32>
    %84 = tpu.matmul %81, %83, %cst_87 {dimension_numbers = #tpu.dot_dimension_numbers<[1], [0], [0], [1], [0, 0, 1, 1], [], []>} : vector<8x4xf32>, vector<4x222xf32>, vector<8x222xf32> -> vector<8x222xf32>
    %85 = arith.addf %80, %84 : vector<8x222xf32>
    %c0_88 = arith.constant 0 : index
    %c28_89 = arith.constant 28 : index
    %86 = vector.load %arg1[%c0_88, %c28_89] : memref<8x36xf32, #tpu.memory_space<vmem>>, vector<8x4xf32>
    %c1_90 = arith.constant 1 : index
    %c0_91 = arith.constant 0 : index
    %c33_92 = arith.constant 33 : index
    %87 = vector.load %arg0[%c1_90, %c0_91, %c33_92] : memref<2x4x256xf32, #tpu.memory_space<vmem>>, vector<1x4x222xf32>
    %88 = vector.shape_cast %87 : vector<1x4x222xf32> to vector<4x222xf32>
    %cst_93 = arith.constant dense<0.000000e+00> : vector<8x222xf32>
    %89 = tpu.matmul %86, %88, %cst_93 {dimension_numbers = #tpu.dot_dimension_numbers<[1], [0], [0], [1], [0, 0, 1, 1], [], []>} : vector<8x4xf32>, vector<4x222xf32>, vector<8x222xf32> -> vector<8x222xf32>
    %90 = arith.addf %85, %89 : vector<8x222xf32>
    %c0_94 = arith.constant 0 : index
    %c32_95 = arith.constant 32 : index
    %91 = vector.load %arg1[%c0_94, %c32_95] : memref<8x36xf32, #tpu.memory_space<vmem>>, vector<8x4xf32>
    %c1_96 = arith.constant 1 : index
    %c0_97 = arith.constant 0 : index
    %c34_98 = arith.constant 34 : index
    %92 = vector.load %arg0[%c1_96, %c0_97, %c34_98] : memref<2x4x256xf32, #tpu.memory_space<vmem>>, vector<1x4x222xf32>
    %93 = vector.shape_cast %92 : vector<1x4x222xf32> to vector<4x222xf32>
    %cst_99 = arith.constant dense<0.000000e+00> : vector<8x222xf32>
    %94 = tpu.matmul %91, %93, %cst_99 {dimension_numbers = #tpu.dot_dimension_numbers<[1], [0], [0], [1], [0, 0, 1, 1], [], []>} : vector<8x4xf32>, vector<4x222xf32>, vector<8x222xf32> -> vector<8x222xf32>
    %95 = arith.addf %90, %94 : vector<8x222xf32>
    %c0_100 = arith.constant 0 : index
    %c0_101 = arith.constant 0 : index
    %96 = vector.load %arg2[%c0_100, %c0_101] : memref<8x1xf32, #tpu.memory_space<vmem>>, vector<8x1xf32>
    %97 = vector.broadcast %96 : vector<8x1xf32> to vector<8x222xf32>
    %98 = arith.addf %95, %97 : vector<8x222xf32>
    %c1_102 = arith.constant 1 : index
    %c0_103 = arith.constant 0 : index
    %c0_104 = arith.constant 0 : index
    %99 = vector.load %arg3[%c1_102, %c0_103, %c0_104] : memref<2x8x224xf32, #tpu.memory_space<vmem>>, vector<1x8x222xf32>
    %100 = vector.shape_cast %99 : vector<1x8x222xf32> to vector<8x222xf32>
    %101 = vector.shape_cast %98 : vector<8x222xf32> to vector<1x8x222xf32>
    tpu.vector_store %arg3[%c1_102, %c0_103, %c0_104], %101 {strides = array<i32>} : memref<2x8x224xf32, #tpu.memory_space<vmem>>, vector<1x8x222xf32>,
    return
  }
}

</mosaic_0001>

<bundles_post_ra>
// kernel: conv3x3_pallas.1
= control target key start
LH: loop header
LB: loop body
LE: loop exit
PB: predicated region body
PF: predicated region fallthrough
CT: control target
= control target key end

     0   :  { %v1775_v2 = vmov 0.0   ;;  %s1776_s16 = smov 127   ;;  %s1777_s18 = smov 124   ;;  %v1789_v6 = vmov 0   ;;  %vm33_vm0 = vcmask 1043456   ;;  %vm28_vm1 = vcmask 1039360   ;;  %s1987_s0 = inlined_call_operand.vmem [shape: f32[2,4,256], index: 0, kind: input, shape index: {}]   ;;  %s1988_s1 = inlined_call_operand.vmem [shape: f32[8,36], index: 1, kind: input, shape index: {}]   ;;  %s1989_s2 = inlined_call_operand.vmem [shape: f32[8,1], index: 2, kind: input, shape index: {}]   ;;  %s1990_s3 = inlined_call_operand.vmem [shape: f32[2,8,224], index: 3, kind: output, shape index: {}]  }
   0x1   :  { %v1814_v0 = vld [vmem:[%s1987_s0 + $0x8] sm:$0xff]  ;;  %v1819_v1 = vld [vmem:[%s1987_s0] sm:$0xff]  ;;  %102 = vmatprep.mubr.f32.mxu0 %v1775_v2  ;;  %923 = vmatprep.mubr.f32.mxu1 %v1775_v2  ;;  %s1778_s19 = smov 126   ;;  %s1779_s20 = smov 120   ;;  %vm30_vm2 = vcmask 31744   ;;  %vm197_vm3 = vcmask 1031168  }
   0x2   :  { %848 = vrot.lane.b32.xlu1 %v1814_v0, %s1776_s16  ;;  %24 = vrot.lane.b32.xlu0 %v1819_v1, %s1776_s16  ;;  %v1827_v3 = vcombine.high %v1814_v0, %v1814_v0  ;;  %v1831_v4 = vcombine.high %v1819_v1, %v1819_v1  ;;  %v1838_v5 = vld [vmem:[%s1988_s1] sm:$0xff]  ;;  %s1780_s1 = smov 112   ;;  %s1781_s21 = smov 116   ;;  %vm289_vm4 = vcmask 916480   ;;  %vm381_vm5 = vcmask 908288  }
   0x3   :  { %s1782_s22 = smov 111   ;;  %s1783_s23 = smov 110   ;;  %1772 = vset.pattern.permute.xlu1 %v1789_v6  ;;  %1771 = vset.pattern.permute.xlu0 %v1789_v6  ;;  %v1644_v7 = vld [vmem:[%s1989_s2] sm:$0xff]  ;;  %vm473_vm6 = vcmask 900096   ;;  %vm565_vm7 = vcmask 785408   ;;  %vm657_vm8 = vcmask 777216  }
   0x4   :  { %s1784_s24 = smov 108   ;;  %s1785_s25 = smov 96   ;;  %vm749_vm9 = vcmask 769024   ;;  %vm14_vm10 = vcmask 786160  }
   0x5   :  { %s1786_s26 = smov 104   ;;  %s1787_s27 = smov 95   ;;  %15 = vst.msk [vmem:[%s1990_s3 + $0x8] sm:$0xff] %vm14_vm10, %v1775_v2  ;;  %16 = vst.msk [vmem:[%s1990_s3 + $0x18] sm:$0xff] %vm14_vm10, %v1775_v2 }
   0x6   :  { %850 = vrot.lane.b32.xlu1 %v1827_v3, %s1776_s16  ;;  %26 = vrot.lane.b32.xlu0 %v1831_v4, %s1776_s16  ;;  %s1788_s28 = smov 100   ;;  %s1790_s29 = smov 94  }
   0xa   :  { %844 = vrot.lane.b32.xlu1 %v1838_v5, %s1777_s18  ;;  %20 = vrot.lane.b32.xlu0 %v1838_v5, %s1777_s18 }
   0xe   :  { %195 = vrot.lane.b32.xlu1 %v1831_v4, %s1778_s19  ;;  %193 = vrot.lane.b32.xlu0 %v1819_v1, %s1778_s19 }
  0x12   :  { %1016 = vrot.lane.b32.xlu1 %v1827_v3, %s1778_s19  ;;  %1014 = vrot.lane.b32.xlu0 %v1814_v0, %s1778_s19 }
  0x16   :  { %1010 = vrot.lane.b32.xlu1 %v1838_v5, %s1779_s20  ;;  %189 = vrot.lane.b32.xlu0 %v1838_v5, %s1779_s20 }
  0x1a   :  { %287 = vrot.lane.b32.xlu1 %v1831_v4, %s1780_s1  ;;  %285 = vrot.lane.b32.xlu0 %v1819_v1, %s1780_s1 }
  0x1e   :  { %1107 = vrot.lane.b32.xlu1 %v1827_v3, %s1780_s1  ;;  %1105 = vrot.lane.b32.xlu0 %v1814_v0, %s1780_s1 }
  0x22   :  { %1101 = vrot.lane.b32.xlu1 %v1838_v5, %s1781_s21  ;;  %281 = vrot.lane.b32.xlu0 %v1838_v5, %s1781_s21 }
  0x26   :  { %379 = vrot.lane.b32.xlu1 %v1831_v4, %s1782_s22  ;;  %377 = vrot.lane.b32.xlu0 %v1819_v1, %s1782_s22 }
  0x2a   :  { %1198 = vrot.lane.b32.xlu1 %v1827_v3, %s1782_s22  ;;  %1196 = vrot.lane.b32.xlu0 %v1814_v0, %s1782_s22 }
  0x2e   :  { %1192 = vrot.lane.b32.xlu1 %v1838_v5, %s1780_s1  ;;  %373 = vrot.lane.b32.xlu0 %v1838_v5, %s1780_s1 }
  0x32   :  { %471 = vrot.lane.b32.xlu1 %v1831_v4, %s1783_s23  ;;  %469 = vrot.lane.b32.xlu0 %v1819_v1, %s1783_s23 }
  0x36   :  { %1289 = vrot.lane.b32.xlu1 %v1827_v3, %s1783_s23  ;;  %1287 = vrot.lane.b32.xlu0 %v1814_v0, %s1783_s23 }
  0x3a   :  { %1283 = vrot.lane.b32.xlu1 %v1838_v5, %s1784_s24  ;;  %465 = vrot.lane.b32.xlu0 %v1838_v5, %s1784_s24 }
  0x3e   :  { %563 = vrot.lane.b32.xlu1 %v1831_v4, %s1785_s25  ;;  %561 = vrot.lane.b32.xlu0 %v1819_v1, %s1785_s25 }
  0x42   :  { %1380 = vrot.lane.b32.xlu1 %v1827_v3, %s1785_s25  ;;  %1378 = vrot.lane.b32.xlu0 %v1814_v0, %s1785_s25 }
  0x46   :  { %1374 = vrot.lane.b32.xlu1 %v1838_v5, %s1786_s26  ;;  %557 = vrot.lane.b32.xlu0 %v1838_v5, %s1786_s26 }
  0x4a   :  { %655 = vrot.lane.b32.xlu1 %v1831_v4, %s1787_s27  ;;  %653 = vrot.lane.b32.xlu0 %v1819_v1, %s1787_s27 }
  0x4e   :  { %1471 = vrot.lane.b32.xlu1 %v1827_v3, %s1787_s27  ;;  %1469 = vrot.lane.b32.xlu0 %v1814_v0, %s1787_s27 }
  0x52   :  { %1465 = vrot.lane.b32.xlu1 %v1838_v5, %s1788_s28  ;;  %649 = vrot.lane.b32.xlu0 %v1838_v5, %s1788_s28 }
  0x56   :  { %747 = vrot.lane.b32.xlu1 %v1831_v4, %s1790_s29  ;;  %745 = vrot.lane.b32.xlu0 %v1819_v1, %s1790_s29 }
  0x5a   :  { %1562 = vrot.lane.b32.xlu1 %v1827_v3, %s1790_s29  ;;  %1560 = vrot.lane.b32.xlu0 %v1814_v0, %s1790_s29 }
  0x5e   :  { %1556 = vrot.lane.b32.xlu1 %v1838_v5, %s1785_s25  ;;  %741 = vrot.lane.b32.xlu0 %v1838_v5, %s1785_s25 }
  0x62   :  { %1647 = vperm.xlu1 %1772, %v1644_v7   ;;  %833 = vperm.xlu0 %1771, %v1644_v7  }
  0x74   :  { %v849_v8 = vpop.permute.xlu1 %848  ;;  %v25_v9 = vpop.permute.xlu0 %24 }
  0x78   :  { %v851_v10 = vpop.permute.xlu1 %850  ;;  %v27_v11 = vpop.permute.xlu0 %26 }
  0x79   :  { %1659 = vmatprep.subr.msk.mxu0 %vm33_vm0, %v27_v11  ;;  %1687 = vmatprep.subr.msk.mxu1 %vm33_vm0, %v851_v10  ;;  %v29_v12 = vsel %vm28_vm1, %v25_v9, %v27_v11  ;;  %v852_v13 = vsel %vm28_vm1, %v849_v8, %v851_v10 }
  0x7a   :  { %1660 = vmatpush1.msk.msra.mxu0 %vm33_vm0, %v29_v12  ;;  %1688 = vmatpush1.msk.msra.mxu1 %vm33_vm0, %v852_v13 }
  0x7b   :  { %1662 = vmatprep.subr.msk.mxu0 %vm33_vm0, %v1831_v4  ;;  %1690 = vmatprep.subr.msk.mxu1 %vm33_vm0, %v1827_v3 }
  0x7c   :  { %v845_v14 = vpop.permute.xlu1 %844  ;;  %v21_v15 = vpop.permute.xlu0 %20 }
  0x7d   :  { %1661 = vmatmul.mubr.msk.f32.vlgmr.msra.gmra.mrb[0].mxu0 %vm30_vm2, %v21_v15  ;;  %1689 = vmatmul.mubr.msk.f32.vlgmr.msra.gmra.mrb[0].mxu1 %vm30_vm2, %v845_v14 }
  0x7e   :  { %1663 = vmatpush1.msk.msra.mxu0 %vm33_vm0, %v1819_v1  ;;  %1691 = vmatpush1.msk.msra.mxu1 %vm33_vm0, %v1814_v0 }
  0x7f   :  { %1000 = vmatprep.mubr.f32.mxu1 %v1775_v2  ;;  %179 = vmatprep.mubr.f32.mxu0 %v1775_v2 }
  0x80   :  { %v196_v16 = vpop.permute.xlu1 %195  ;;  %v194_v17 = vpop.permute.xlu0 %193 }
  0x81   :  { %1665 = vmatprep.subr.msk.mxu0 %vm33_vm0, %v196_v16  ;;  %v198_v20 = vsel %vm197_vm3, %v194_v17, %v196_v16 }
  0x84   :  { %v1017_v18 = vpop.permute.xlu1 %1016  ;;  %v1015_v19 = vpop.permute.xlu0 %1014 }
  0x85   :  { %v1018_v21 = vsel %vm197_vm3, %v1015_v19, %v1017_v18  ;;  %1664 = vmatmul.mubr.msk.f32.vlgmr.msra.gmra.mrb[0].mxu0 %vm30_vm2, %v1838_v5  ;;  %1692 = vmatmul.mubr.msk.f32.vlgmr.msra.gmra.mrb[0].mxu1 %vm30_vm2, %v1838_v5 }
  0x86   :  { %1666 = vmatpush1.msk.msra.mxu0 %vm33_vm0, %v198_v20  ;;  %1694 = vmatprep.subr.msk.mxu1 %vm33_vm0, %v1017_v18 }
  0x87   :  { %1695 = vmatpush1.msk.msra.mxu1 %vm33_vm0, %v1018_v21  ;;  %1089 = vmatprep.mubr.f32.mxu1 %v1775_v2 }
  0x88   :  { %v1011_v22 = vpop.permute.xlu1 %1010  ;;  %v190_v23 = vpop.permute.xlu0 %189  ;;  %269 = vmatprep.mubr.f32.mxu0 %v1775_v2 }
  0x8c   :  { %v288_v24 = vpop.permute.xlu1 %287  ;;  %v286_v25 = vpop.permute.xlu0 %285 }
  0x8d   :  { %v290_v26 = vsel %vm289_vm4, %v286_v25, %v288_v24  ;;  %1667 = vmatmul.mubr.msk.f32.vlgmr.msra.gmra.mrb[0].mxu0 %vm30_vm2, %v190_v23  ;;  %1668 = vmatprep.subr.msk.mxu0 %vm33_vm0, %v288_v24 }
  0x8e   :  { %1696 = vmatmul.mubr.msk.f32.vlgmr.msra.gmra.mrb[0].mxu1 %vm30_vm2, %v1011_v22  ;;  %1669 = vmatpush1.msk.msra.mxu0 %vm33_vm0, %v290_v26 }
  0x8f   :  { %361 = vmatprep.mubr.f32.mxu0 %v1775_v2  ;;  %1180 = vmatprep.mubr.f32.mxu1 %v1775_v2 }
  0x90   :  { %v1108_v27 = vpop.permute.xlu1 %1107  ;;  %v1106_v28 = vpop.permute.xlu0 %1105 }
  0x91   :  { %v1109_v29 = vsel %vm289_vm4, %v1106_v28, %v1108_v27  ;;  %1698 = vmatprep.subr.msk.mxu1 %vm33_vm0, %v1108_v27 }
  0x92   :  { %1699 = vmatpush1.msk.msra.mxu1 %vm33_vm0, %v1109_v29 }
  0x94   :  { %v1102_v30 = vpop.permute.xlu1 %1101  ;;  %v282_v31 = vpop.permute.xlu0 %281 }
  0x95   :  { %1670 = vmatmul.mubr.msk.f32.vlgmr.msra.gmra.mrb[0].mxu0 %vm30_vm2, %v282_v31 }
  0x96   :  { %1700 = vmatmul.mubr.msk.f32.vlgmr.msra.gmra.mrb[0].mxu1 %vm30_vm2, %v1102_v30  ;;  %453 = vmatprep.mubr.f32.mxu0 %v1775_v2 }
  0x97   :  { %1271 = vmatprep.mubr.f32.mxu1 %v1775_v2 }
  0x98   :  { %v380_v32 = vpop.permute.xlu1 %379  ;;  %v378_v33 = vpop.permute.xlu0 %377 }
  0x99   :  { %v382_v34 = vsel %vm381_vm5, %v378_v33, %v380_v32  ;;  %1671 = vmatprep.subr.msk.mxu0 %vm33_vm0, %v380_v32 }
  0x9a   :  { %1672 = vmatpush1.msk.msra.mxu0 %vm33_vm0, %v382_v34 }
  0x9c   :  { %v1199_v35 = vpop.permute.xlu1 %1198  ;;  %v1197_v36 = vpop.permute.xlu0 %1196 }
  0x9d   :  { %v1200_v37 = vsel %vm381_vm5, %v1197_v36, %v1199_v35  ;;  %1702 = vmatprep.subr.msk.mxu1 %vm33_vm0, %v1199_v35 }
  0x9e   :  { %1703 = vmatpush1.msk.msra.mxu1 %vm33_vm0, %v1200_v37 }
  0xa0   :  { %v1193_v38 = vpop.permute.xlu1 %1192  ;;  %v374_v39 = vpop.permute.xlu0 %373 }
  0xa1   :  { %1673 = vmatmul.mubr.msk.f32.vlgmr.msra.gmra.mrb[0].mxu0 %vm30_vm2, %v374_v39  ;;  %1704 = vmatmul.mubr.msk.f32.vlgmr.msra.gmra.mrb[0].mxu1 %vm30_vm2, %v1193_v38 }
  0xa2   :  { %545 = vmatprep.mubr.f32.mxu0 %v1775_v2  ;;  %1362 = vmatprep.mubr.f32.mxu1 %v1775_v2 }
  0xa4   :  { %v472_v40 = vpop.permute.xlu1 %471  ;;  %v470_v41 = vpop.permute.xlu0 %469 }
  0xa5   :  { %v474_v42 = vsel %vm473_vm6, %v470_v41, %v472_v40  ;;  %1674 = vmatprep.subr.msk.mxu0 %vm33_vm0, %v472_v40 }
  0xa6   :  { %1675 = vmatpush1.msk.msra.mxu0 %vm33_vm0, %v474_v42 }
  0xa8   :  { %v1290_v43 = vpop.permute.xlu1 %1289  ;;  %v1288_v44 = vpop.permute.xlu0 %1287 }
  0xa9   :  { %v1291_v45 = vsel %vm473_vm6, %v1288_v44, %v1290_v43  ;;  %1706 = vmatprep.subr.msk.mxu1 %vm33_vm0, %v1290_v43 }
  0xaa   :  { %1707 = vmatpush1.msk.msra.mxu1 %vm33_vm0, %v1291_v45 }
  0xac   :  { %v1284_v46 = vpop.permute.xlu1 %1283  ;;  %v466_v47 = vpop.permute.xlu0 %465 }
  0xad   :  { %1676 = vmatmul.mubr.msk.f32.vlgmr.msra.gmra.mrb[0].mxu0 %vm30_vm2, %v466_v47  ;;  %1708 = vmatmul.mubr.msk.f32.vlgmr.msra.gmra.mrb[0].mxu1 %vm30_vm2, %v1284_v46 }
  0xae   :  { %637 = vmatprep.mubr.f32.mxu0 %v1775_v2  ;;  %1453 = vmatprep.mubr.f32.mxu1 %v1775_v2 }
  0xb0   :  { %v564_v48 = vpop.permute.xlu1 %563  ;;  %v562_v49 = vpop.permute.xlu0 %561 }
  0xb1   :  { %v566_v50 = vsel %vm565_vm7, %v562_v49, %v564_v48  ;;  %1677 = vmatprep.subr.msk.mxu0 %vm33_vm0, %v564_v48 }
  0xb2   :  { %1678 = vmatpush1.msk.msra.mxu0 %vm33_vm0, %v566_v50 }
  0xb4   :  { %v1381_v51 = vpop.permute.xlu1 %1380  ;;  %v1379_v52 = vpop.permute.xlu0 %1378 }
  0xb5   :  { %v1382_v53 = vsel %vm565_vm7, %v1379_v52, %v1381_v51  ;;  %1710 = vmatprep.subr.msk.mxu1 %vm33_vm0, %v1381_v51 }
  0xb6   :  { %1711 = vmatpush1.msk.msra.mxu1 %vm33_vm0, %v1382_v53 }
  0xb8   :  { %v1375_v54 = vpop.permute.xlu1 %1374  ;;  %v558_v55 = vpop.permute.xlu0 %557 }
  0xb9   :  { %1679 = vmatmul.mubr.msk.f32.vlgmr.msra.gmra.mrb[0].mxu0 %vm30_vm2, %v558_v55  ;;  %1712 = vmatmul.mubr.msk.f32.vlgmr.msra.gmra.mrb[0].mxu1 %vm30_vm2, %v1375_v54 }
  0xba   :  { %729 = vmatprep.mubr.f32.mxu0 %v1775_v2  ;;  %1544 = vmatprep.mubr.f32.mxu1 %v1775_v2 }
  0xbc   :  { %v656_v56 = vpop.permute.xlu1 %655  ;;  %v654_v57 = vpop.permute.xlu0 %653 }
  0xbd   :  { %v658_v58 = vsel %vm657_vm8, %v654_v57, %v656_v56  ;;  %1680 = vmatprep.subr.msk.mxu0 %vm33_vm0, %v656_v56 }
  0xbe   :  { %1681 = vmatpush1.msk.msra.mxu0 %vm33_vm0, %v658_v58 }
  0xc0   :  { %v1472_v59 = vpop.permute.xlu1 %1471  ;;  %v1470_v60 = vpop.permute.xlu0 %1469 }
  0xc1   :  { %v1473_v61 = vsel %vm657_vm8, %v1470_v60, %v1472_v59  ;;  %1714 = vmatprep.subr.msk.mxu1 %vm33_vm0, %v1472_v59 }
  0xc2   :  { %1715 = vmatpush1.msk.msra.mxu1 %vm33_vm0, %v1473_v61 }
  0xc4   :  { %v1466_v62 = vpop.permute.xlu1 %1465  ;;  %v650_v63 = vpop.permute.xlu0 %649 }
  0xc5   :  { %1682 = vmatmul.mubr.msk.f32.vlgmr.msra.gmra.mrb[0].mxu0 %vm30_vm2, %v650_v63  ;;  %1716 = vmatmul.mubr.msk.f32.vlgmr.msra.gmra.mrb[0].mxu1 %vm30_vm2, %v1466_v62 }
  0xc6   :  { %821 = vmatprep.mubr.f32.mxu0 %v1775_v2  ;;  %1635 = vmatprep.mubr.f32.mxu1 %v1775_v2 }
  0xc8   :  { %v748_v0 = vpop.permute.xlu1 %747  ;;  %v746_v1 = vpop.permute.xlu0 %745 }
  0xc9   :  { %v750_v3 = vsel %vm749_vm9, %v746_v1, %v748_v0  ;;  %1683 = vmatprep.subr.msk.mxu0 %vm33_vm0, %v748_v0 }
  0xca   :  { %1684 = vmatpush1.msk.msra.mxu0 %vm33_vm0, %v750_v3 }
  0xcc   :  { %v1563_v4 = vpop.permute.xlu1 %1562  ;;  %v1561_v5 = vpop.permute.xlu0 %1560 }
  0xcd   :  { %v1564_v6 = vsel %vm749_vm9, %v1561_v5, %v1563_v4  ;;  %1718 = vmatprep.subr.msk.mxu1 %vm33_vm0, %v1563_v4 }
  0xce   :  { %1719 = vmatpush1.msk.msra.mxu1 %vm33_vm0, %v1564_v6 }
  0xd0   :  { %v1557_v7 = vpop.permute.xlu1 %1556  ;;  %v742_v8 = vpop.permute.xlu0 %741 }
  0xd1   :  { %1685 = vmatmul.mubr.msk.f32.vlgmr.msra.gmra.mrb[0].mxu0 %vm30_vm2, %v742_v8  ;;  %1720 = vmatmul.mubr.msk.f32.vlgmr.msra.gmra.mrb[0].mxu1 %vm30_vm2, %v1557_v7 }
  0xe1   :  { %v1648_v9 = vpop.permute.xlu1 %1647  ;;  %v834_v10 = vpop.permute.xlu0 %833 }
 0x1a4   :  { %v823_v11 = vpop.f32.mrb[0].mxu0  ;;  %v1637_v12 = vpop.f32.mrb[0].mxu1 }
 0x1a5   :  { %v1650_v13 = vadd.f32 %v1648_v9, %v1637_v12  ;;  %v836_v14 = vadd.f32 %v834_v10, %v823_v11  ;;  %v825_v15 = vpop.f32.mrb[1].mxu0  ;;  %v1639_v16 = vpop.f32.mrb[1].mxu1 }
 0x1a6   :  { %v837_v17 = vadd.f32 %v834_v10, %v825_v15  ;;  %v1651_v18 = vadd.f32 %v1648_v9, %v1639_v16 }
 0x1a7   :  { %1721 = vst [vmem:[%s1990_s3 + $0x10] sm:$0xff] %v1650_v13  ;;  %838 = vst [vmem:[%s1990_s3] sm:$0xff] %v836_v14 }
 0x1a8   :  { %839 = vst.msk [vmem:[%s1990_s3 + $0x8] sm:$0xff] %vm749_vm9, %v837_v17  ;;  %1722 = vst.msk [vmem:[%s1990_s3 + $0x18] sm:$0xff] %vm749_vm9, %v1651_v18 }

</bundles_post_ra>
